<compile_context>
chip_gen: v5e
topology: v5e:2x2
jax: 0.10.0
libtpu: 0.0.40
codegen_flags: <defaults>
</compile_context>

<pallas_src>
import jax
import jax.numpy as jnp
from jax.experimental import pallas as pl
from jax.experimental.pallas import tpu as pltpu

# ---------------- static config (args) ----------------
BATCH = 2
NUM_NODE = 8
SNPSTS_LEN = 3
HIS_LEN = 5            # his_len = snpsts_len + k*(snpsts_len-1)
IN_DIM = 16
HID_DIM = 32
PRED_LEN = 4
LAYERS = 2
LN_EPS = 1e-5
# TODO(synk): the reference GCN class / dgl graph machinery is not provided; a
# standard weighted GraphConv stack h <- relu(A @ h @ W_l + b_l) is used,
# `channels` is unused and dropout is treated as eval-mode (identity).

BH = BATCH * HID_DIM                 # 64  (batch fused along lanes)
CHUNK_ROWS = SNPSTS_LEN * NUM_NODE   # 24  (rows of one connected graph)
TOTAL_ROWS = HIS_LEN * NUM_NODE      # 40  (rows of one batch element)
LANE = 128                           # native lane width (for the final transpose)


def generate_checkpoints(snpsts_len, his_len):
    mark = snpsts_len
    cps = []
    while mark < his_len:
        cps.append(mark)
        mark += snpsts_len - 1
    if cps[-1] != his_len:
        cps.append(his_len)
    return cps


CPS = generate_checkpoints(SNPSTS_LEN, HIS_LEN)   # [3, 5] -- static


def _round8(x):
    return (x + 7) // 8 * 8


# ---- packed weight-slab row offsets (all 8-aligned, every block starts at lane 0) ----
IN_W_R0 = 0                                        # in_w block-diag   [B*IN, B*H]
IN_B_R0 = _round8(IN_W_R0 + BATCH * IN_DIM)        # 32: in_b tiled    [1, B*H]
ADJ_R0 = _round8(IN_B_R0 + 1)                      # 40: combined adj  [S*N, S*N]
GW_R0 = _round8(ADJ_R0 + CHUNK_ROWS)               # 64: gcn_w block-diag per layer [B*H, B*H]
GB_R0 = _round8(GW_R0 + LAYERS * BH)               # 192: gcn_b tiled, one per 8-row group
W2_R0 = _round8(GB_R0 + 8 * LAYERS)                # 208: head map     [P*B*H, B*H]
GSLAB_ROWS = W2_R0 + PRED_LEN * BH                 # 464


# ---------------- single fused Pallas kernel ----------------
def _fused_forward_kernel(x_ref, w_ref, c_ref, o_ref, feat_buf):
    # x:    [B*T*N, IN_DIM]               (VMEM)
    # w:    [GSLAB_ROWS, B*H] packed slab (VMEM)
    # c:    [2*P + 1] = [w1(P), b1(P), b2] (SMEM scalars)
    # o:    [B*P, N]
    # feat_buf: VMEM scratch [S*N, B*H] used for the in-place checkpoint carry.

    # 1) in_linear, both batches fused along lanes via the block-diag weight:
    #    xcat[t*N+n, b*IN+i] = x[b,t,n,i]  ->  x2d[t*N+n, b*H+h]
    xcat = jnp.concatenate(
        [x_ref[b * TOTAL_ROWS:(b + 1) * TOTAL_ROWS, :] for b in range(BATCH)],
        axis=1)                                                        # [T*N, B*IN]
    x2d = (jnp.dot(xcat, w_ref[IN_W_R0:IN_W_R0 + BATCH * IN_DIM, :],
                   preferred_element_type=jnp.float32)
           + w_ref[IN_B_R0:IN_B_R0 + 1, :])                            # [T*N, B*H]

    adj = w_ref[ADJ_R0:ADJ_R0 + CHUNK_ROWS, 0:CHUNK_ROWS]              # [S*N, S*N]
    gws = [w_ref[GW_R0 + l * BH:GW_R0 + (l + 1) * BH, :] for l in range(LAYERS)]
    gbs = [w_ref[GB_R0 + 8 * l:GB_R0 + 8 * l + 1, :] for l in range(LAYERS)]

    def gcn_block(feat):
        # feat: [S*N, B*H]; adjacency applied once for both batches (one MXU push),
        # layer weights are block-diagonal over the batch lanes (one push each).
        h = feat
        for l in range(LAYERS):
            agg = jnp.dot(adj, h, preferred_element_type=jnp.float32)
            h = jnp.maximum(
                jnp.dot(agg, gws[l], preferred_element_type=jnp.float32) + gbs[l],
                0.0)
        conv = h + feat                                                # residual
        # nn.LayerNorm([B*S*N, H], elementwise_affine=False) applied to a tensor of
        # exactly that shape normalizes over ALL elements (both dims).  The fused
        # [S*N, B*H] tile holds exactly those B*S*N*H elements, so the global
        # mean/var below matches the PyTorch reference.
        mean = jnp.mean(conv)
        var = jnp.mean((conv - mean) ** 2)
        return (conv - mean) * jax.lax.rsqrt(var + LN_EPS)

    carry_start = (SNPSTS_LEN - 1) * NUM_NODE

    # 2) checkpoint loop (statically unrolled: CPS = [3, 5])
    normed = gcn_block(x2d[0:CHUNK_ROWS, :])                           # snapshots [0, S)
    last = normed[carry_start:CHUNK_ROWS, :]                           # [N, B*H]

    left = CPS[0]
    for right in CPS[1:]:
        # assemble [last snapshot | new snapshots] in place (no value concats)
        feat_buf[0:NUM_NODE, :] = last
        feat_buf[NUM_NODE:CHUNK_ROWS, :] = x2d[left * NUM_NODE:right * NUM_NODE, :]
        normed = gcn_block(feat_buf[...])
        last = normed[carry_start:CHUNK_ROWS, :]
        left = right

    # 3) output head, lane-dense:
    #    out[b*P+p, n] = sum_h relu(last[n, b*H+h]*w1[p] + b1[p]) * w2[h] + b2
    pieces = [last * c_ref[p] + c_ref[PRED_LEN + p] for p in range(PRED_LEN)]
    t = jnp.maximum(jnp.concatenate(pieces, axis=1), 0.0)              # [N, P*B*H]
    w2m = w_ref[W2_R0:W2_R0 + PRED_LEN * BH, :]                        # [P*B*H, B*H] (sparse map)
    out_wide = jnp.dot(t, w2m, preferred_element_type=jnp.float32)     # [N, B*H]; cols >= B*P are 0
    # transpose n <-> (b,p) in-kernel on a native (8,128) tile, emit final layout
    out_pad = jnp.concatenate(
        [out_wide, jnp.zeros((NUM_NODE, LANE - BH), jnp.float32)], axis=1)   # [N, 128]
    out_t = jnp.transpose(out_pad)                                     # [128, N]
    o_ref[...] = out_t[0:BATCH * PRED_LEN, :] + c_ref[2 * PRED_LEN]    # [B*P, N]


_VMEM = pl.BlockSpec(memory_space=pltpu.MemorySpace.VMEM)
_SMEM = pl.BlockSpec(memory_space=pltpu.MemorySpace.SMEM)

# rough advisory cost estimate (helps XLA schedule the custom call)
_COST = pl.CostEstimate(flops=1_600_000, transcendentals=4, bytes_accessed=150_000)

_fused_forward = pl.pallas_call(
    _fused_forward_kernel,
    out_shape=jax.ShapeDtypeStruct((BATCH * PRED_LEN, NUM_NODE), jnp.float32),
    in_specs=[_VMEM, _VMEM, _SMEM],
    out_specs=_VMEM,
    scratch_shapes=[pltpu.VMEM((CHUNK_ROWS, BH), jnp.float32)],
    cost_estimate=_COST,
)


# ---------------- plain-JAX glue (runs once, outside the hot path) ----------------
def build_combined_adj(adj_mx, snpsts_len):
    """Replicates Model._combine_graph (including its fixed-offset behaviour).
    Returns the PER-BATCH [S*N, S*N] weighted adjacency; the kernel applies it
    to the lane-fused batch tile, which is equivalent to (and cheaper than) the
    dense block-diagonal dgl.batch form."""
    n = adj_mx.shape[0]
    rst = jnp.zeros((n * snpsts_len, n * snpsts_len), jnp.float32)
    offset = 0
    for v_idx in range(snpsts_len):
        if v_idx == snpsts_len - 1:
            rst = rst.at[-n:, -n:].set(adj_mx)
        else:
            hstack = jnp.concatenate([adj_mx, adj_mx], axis=-1)
            rst = rst.at[offset:offset + n, offset:offset + 2 * n].set(hstack)
            # NOTE: offset intentionally not incremented (matches reference code)
    return rst.astype(jnp.float32)


def model_forward(params, inputs):
    B, T, N, _ = inputs.shape
    x2d = inputs.reshape(B * T * N, IN_DIM)                 # contiguous -> free
    out2d = _fused_forward(x2d, params["gslab"], params["consts"])   # [B*P, N]
    # kernel already emits the final [B, P, N] row-major layout -> free reshape
    return out2d.reshape(B, PRED_LEN, N, 1)


def init_params(key):
    ks = jax.random.split(key, 10)
    # deterministic synthetic adjacency (args.adj_mx)
    u = jax.random.uniform(ks[0], (NUM_NODE, NUM_NODE), jnp.float32)
    adj_mx = jnp.where(u > 0.5, u, 0.0) + jnp.eye(NUM_NODE, dtype=jnp.float32)
    adj = build_combined_adj(adj_mx, SNPSTS_LEN)                       # [S*N, S*N]

    in_w = 0.1 * jax.random.normal(ks[1], (IN_DIM, HID_DIM), jnp.float32)
    in_b = 0.1 * jax.random.normal(ks[2], (HID_DIM,), jnp.float32)
    gcn_w = 0.1 * jax.random.normal(ks[3], (LAYERS, HID_DIM, HID_DIM), jnp.float32)
    gcn_b = 0.1 * jax.random.normal(ks[4], (LAYERS, HID_DIM), jnp.float32)
    w1 = 0.5 * jax.random.normal(ks[5], (PRED_LEN,), jnp.float32)      # Linear(1, P).weight
    b1 = 0.1 * jax.random.normal(ks[6], (PRED_LEN,), jnp.float32)
    w2 = 0.1 * jax.random.normal(ks[7], (HID_DIM,), jnp.float32)       # Linear(H, 1).weight
    b2 = 0.1 * jax.random.normal(ks[8], (1,), jnp.float32)

    # ---- pack everything the kernel needs into ONE VMEM slab + ONE SMEM vector ----
    gslab = jnp.zeros((GSLAB_ROWS, BH), jnp.float32)
    for b in range(BATCH):                                             # block-diag in_w
        gslab = gslab.at[IN_W_R0 + b * IN_DIM:IN_W_R0 + (b + 1) * IN_DIM,
                         b * HID_DIM:(b + 1) * HID_DIM].set(in_w)
    gslab = gslab.at[IN_B_R0, :].set(jnp.tile(in_b, BATCH))
    gslab = gslab.at[ADJ_R0:ADJ_R0 + CHUNK_ROWS, 0:CHUNK_ROWS].set(adj)
    for l in range(LAYERS):                                            # block-diag gcn_w
        r = GW_R0 + l * BH
        for b in range(BATCH):
            gslab = gslab.at[r + b * HID_DIM:r + (b + 1) * HID_DIM,
                             b * HID_DIM:(b + 1) * HID_DIM].set(gcn_w[l])
        gslab = gslab.at[GB_R0 + 8 * l, :].set(jnp.tile(gcn_b[l], BATCH))
    # head contraction map: row L = p*B*H + b*H + h, col c = b*P + p, value w2[h]
    for p in range(PRED_LEN):
        for b in range(BATCH):
            r = W2_R0 + p * BH + b * HID_DIM
            gslab = gslab.at[r:r + HID_DIM, b * PRED_LEN + p].set(w2)

    consts = jnp.concatenate([w1, b1, b2])                             # [2*P + 1]
    return {"gslab": gslab, "consts": consts}


if __name__ == "__main__":
    key = jax.random.PRNGKey(0)
    k_params, k_x = jax.random.split(key)
    params = init_params(k_params)
    inputs = jax.random.normal(k_x, (BATCH, HIS_LEN, NUM_NODE, IN_DIM), jnp.float32)

    fwd = jax.jit(model_forward)
    out = jax.block_until_ready(fwd(params, inputs))
    assert out.shape == (BATCH, PRED_LEN, NUM_NODE, 1), out.shape
    assert bool(jnp.all(jnp.isfinite(out)))
    print("KERNEL_OK")
</pallas_src>

<mosaic_0001>
module attributes {stable_mosaic.version = 11 : i64} {
  func.func @_fused_forward_kernel(%arg0: memref<80x16xf32, #tpu.memory_space<vmem>>, %arg1: memref<464x64xf32, #tpu.memory_space<vmem>>, %arg2: memref<9xf32, #tpu.memory_space<smem>>, %arg3: memref<8x8xf32, #tpu.memory_space<vmem>>, %arg4: memref<24x64xf32, #tpu.memory_space<vmem>>) attributes {dimension_semantics = [], scalar_prefetch = 0 : i64, scratch_operands = 1 : i64, tpu.core_type = #tpu.core_type<tc>} {
    %c0 = arith.constant 0 : index
    %c0_0 = arith.constant 0 : index
    %0 = vector.load %arg0[%c0, %c0_0] : memref<80x16xf32, #tpu.memory_space<vmem>>, vector<40x16xf32>
    %c40 = arith.constant 40 : index
    %c0_1 = arith.constant 0 : index
    %1 = vector.load %arg0[%c40, %c0_1] : memref<80x16xf32, #tpu.memory_space<vmem>>, vector<40x16xf32>
    %2 = tpu.concatenate %0, %1 in 1 : vector<40x16xf32>, vector<40x16xf32> -> vector<40x32xf32>
    %c0_2 = arith.constant 0 : index
    %c0_3 = arith.constant 0 : index
    %3 = vector.load %arg1[%c0_2, %c0_3] : memref<464x64xf32, #tpu.memory_space<vmem>>, vector<32x64xf32>
    %cst = arith.constant dense<0.000000e+00> : vector<40x64xf32>
    %4 = tpu.matmul %2, %3, %cst {dimension_numbers = #tpu.dot_dimension_numbers<[1], [0], [0], [1], [0, 0, 1, 1], [], []>} : vector<40x32xf32>, vector<32x64xf32>, vector<40x64xf32> -> vector<40x64xf32>
    %c32 = arith.constant 32 : index
    %c0_4 = arith.constant 0 : index
    %5 = vector.load %arg1[%c32, %c0_4] : memref<464x64xf32, #tpu.memory_space<vmem>>, vector<1x64xf32>
    %6 = vector.broadcast %5 : vector<1x64xf32> to vector<40x64xf32>
    %7 = arith.addf %4, %6 : vector<40x64xf32>
    %c40_5 = arith.constant 40 : index
    %c0_6 = arith.constant 0 : index
    %8 = vector.load %arg1[%c40_5, %c0_6] : memref<464x64xf32, #tpu.memory_space<vmem>>, vector<24x24xf32>
    %c64 = arith.constant 64 : index
    %c0_7 = arith.constant 0 : index
    %9 = vector.load %arg1[%c64, %c0_7] : memref<464x64xf32, #tpu.memory_space<vmem>>, vector<64x64xf32>
    %c128 = arith.constant 128 : index
    %c0_8 = arith.constant 0 : index
    %10 = vector.load %arg1[%c128, %c0_8] : memref<464x64xf32, #tpu.memory_space<vmem>>, vector<64x64xf32>
    %c192 = arith.constant 192 : index
    %c0_9 = arith.constant 0 : index
    %11 = vector.load %arg1[%c192, %c0_9] : memref<464x64xf32, #tpu.memory_space<vmem>>, vector<1x64xf32>
    %c200 = arith.constant 200 : index
    %c0_10 = arith.constant 0 : index
    %12 = vector.load %arg1[%c200, %c0_10] : memref<464x64xf32, #tpu.memory_space<vmem>>, vector<1x64xf32>
    %13 = vector.extract_strided_slice %7 {offsets = [0, 0], sizes = [24, 64], strides = [1, 1]} : vector<40x64xf32> to vector<24x64xf32>
    %cst_11 = arith.constant dense<0.000000e+00> : vector<24x64xf32>
    %14 = tpu.matmul %8, %13, %cst_11 {dimension_numbers = #tpu.dot_dimension_numbers<[1], [0], [0], [1], [0, 0, 1, 1], [], []>} : vector<24x24xf32>, vector<24x64xf32>, vector<24x64xf32> -> vector<24x64xf32>
    %cst_12 = arith.constant dense<0.000000e+00> : vector<24x64xf32>
    %15 = tpu.matmul %14, %9, %cst_12 {dimension_numbers = #tpu.dot_dimension_numbers<[1], [0], [0], [1], [0, 0, 1, 1], [], []>} : vector<24x64xf32>, vector<64x64xf32>, vector<24x64xf32> -> vector<24x64xf32>
    %16 = vector.broadcast %11 : vector<1x64xf32> to vector<24x64xf32>
    %17 = arith.addf %15, %16 : vector<24x64xf32>
    %cst_13 = arith.constant 0.000000e+00 : f32
    %18 = vector.broadcast %cst_13 : f32 to vector<24x64xf32>
    %19 = arith.maximumf %17, %18 : vector<24x64xf32>
    %cst_14 = arith.constant dense<0.000000e+00> : vector<24x64xf32>
    %20 = tpu.matmul %8, %19, %cst_14 {dimension_numbers = #tpu.dot_dimension_numbers<[1], [0], [0], [1], [0, 0, 1, 1], [], []>} : vector<24x24xf32>, vector<24x64xf32>, vector<24x64xf32> -> vector<24x64xf32>
    %cst_15 = arith.constant dense<0.000000e+00> : vector<24x64xf32>
    %21 = tpu.matmul %20, %10, %cst_15 {dimension_numbers = #tpu.dot_dimension_numbers<[1], [0], [0], [1], [0, 0, 1, 1], [], []>} : vector<24x64xf32>, vector<64x64xf32>, vector<24x64xf32> -> vector<24x64xf32>
    %22 = vector.broadcast %12 : vector<1x64xf32> to vector<24x64xf32>
    %23 = arith.addf %21, %22 : vector<24x64xf32>
    %cst_16 = arith.constant 0.000000e+00 : f32
    %24 = vector.broadcast %cst_16 : f32 to vector<24x64xf32>
    %25 = arith.maximumf %23, %24 : vector<24x64xf32>
    %26 = arith.addf %25, %13 : vector<24x64xf32>
    %27 = vector.shape_cast %26 : vector<24x64xf32> to vector<1x24x64xf32>
    %cst_17 = arith.constant dense<0.000000e+00> : vector<1xf32>
    %28 = vector.multi_reduction <add>, %27, %cst_17 [1, 2] : vector<1x24x64xf32> to vector<1xf32>
    %29 = vector.shape_cast %28 : vector<1xf32> to vector<1x1x1xf32>
    %30 = vector.extract %29[0, 0, 0] : f32 from vector<1x1x1xf32>
    %cst_18 = arith.constant 1.536000e+03 : f32
    %31 = arith.divf %30, %cst_18 : f32
    %32 = vector.broadcast %31 : f32 to vector<24x64xf32>
    %33 = arith.subf %26, %32 : vector<24x64xf32>
    %34 = arith.mulf %33, %33 : vector<24x64xf32>
    %35 = vector.shape_cast %34 : vector<24x64xf32> to vector<1x24x64xf32>
    %cst_19 = arith.constant dense<0.000000e+00> : vector<1xf32>
    %36 = vector.multi_reduction <add>, %35, %cst_19 [1, 2] : vector<1x24x64xf32> to vector<1xf32>
    %37 = vector.shape_cast %36 : vector<1xf32> to vector<1x1x1xf32>
    %38 = vector.extract %37[0, 0, 0] : f32 from vector<1x1x1xf32>
    %cst_20 = arith.constant 1.536000e+03 : f32
    %39 = arith.divf %38, %cst_20 : f32
    %40 = vector.broadcast %31 : f32 to vector<24x64xf32>
    %41 = arith.subf %26, %40 : vector<24x64xf32>
    %cst_21 = arith.constant 9.99999974E-6 : f32
    %42 = arith.addf %39, %cst_21 : f32
    %43 = math.rsqrt %42 : f32
    %44 = vector.broadcast %43 : f32 to vector<24x64xf32>
    %45 = arith.mulf %41, %44 : vector<24x64xf32>
    %46 = vector.extract_strided_slice %45 {offsets = [16, 0], sizes = [8, 64], strides = [1, 1]} : vector<24x64xf32> to vector<8x64xf32>
    %c0_22 = arith.constant 0 : index
    %c0_23 = arith.constant 0 : index
    %47 = vector.load %arg4[%c0_22, %c0_23] : memref<24x64xf32, #tpu.memory_space<vmem>>, vector<8x64xf32>
    tpu.vector_store %arg4[%c0_22, %c0_23], %46 {strides = array<i32>} : memref<24x64xf32, #tpu.memory_space<vmem>>, vector<8x64xf32>,
    %48 = vector.extract_strided_slice %7 {offsets = [24, 0], sizes = [16, 64], strides = [1, 1]} : vector<40x64xf32> to vector<16x64xf32>
    %c8 = arith.constant 8 : index
    %c0_24 = arith.constant 0 : index
    %49 = vector.load %arg4[%c8, %c0_24] : memref<24x64xf32, #tpu.memory_space<vmem>>, vector<16x64xf32>
    tpu.vector_store %arg4[%c8, %c0_24], %48 {strides = array<i32>} : memref<24x64xf32, #tpu.memory_space<vmem>>, vector<16x64xf32>,
    %c0_25 = arith.constant 0 : index
    %c0_26 = arith.constant 0 : index
    %50 = vector.load %arg4[%c0_25, %c0_26] : memref<24x64xf32, #tpu.memory_space<vmem>>, vector<24x64xf32>
    %cst_27 = arith.constant dense<0.000000e+00> : vector<24x64xf32>
    %51 = tpu.matmul %8, %50, %cst_27 {dimension_numbers = #tpu.dot_dimension_numbers<[1], [0], [0], [1], [0, 0, 1, 1], [], []>} : vector<24x24xf32>, vector<24x64xf32>, vector<24x64xf32> -> vector<24x64xf32>
    %cst_28 = arith.constant dense<0.000000e+00> : vector<24x64xf32>
    %52 = tpu.matmul %51, %9, %cst_28 {dimension_numbers = #tpu.dot_dimension_numbers<[1], [0], [0], [1], [0, 0, 1, 1], [], []>} : vector<24x64xf32>, vector<64x64xf32>, vector<24x64xf32> -> vector<24x64xf32>
    %53 = vector.broadcast %11 : vector<1x64xf32> to vector<24x64xf32>
    %54 = arith.addf %52, %53 : vector<24x64xf32>
    %cst_29 = arith.constant 0.000000e+00 : f32
    %55 = vector.broadcast %cst_29 : f32 to vector<24x64xf32>
    %56 = arith.maximumf %54, %55 : vector<24x64xf32>
    %cst_30 = arith.constant dense<0.000000e+00> : vector<24x64xf32>
    %57 = tpu.matmul %8, %56, %cst_30 {dimension_numbers = #tpu.dot_dimension_numbers<[1], [0], [0], [1], [0, 0, 1, 1], [], []>} : vector<24x24xf32>, vector<24x64xf32>, vector<24x64xf32> -> vector<24x64xf32>
    %cst_31 = arith.constant dense<0.000000e+00> : vector<24x64xf32>
    %58 = tpu.matmul %57, %10, %cst_31 {dimension_numbers = #tpu.dot_dimension_numbers<[1], [0], [0], [1], [0, 0, 1, 1], [], []>} : vector<24x64xf32>, vector<64x64xf32>, vector<24x64xf32> -> vector<24x64xf32>
    %59 = vector.broadcast %12 : vector<1x64xf32> to vector<24x64xf32>
    %60 = arith.addf %58, %59 : vector<24x64xf32>
    %cst_32 = arith.constant 0.000000e+00 : f32
    %61 = vector.broadcast %cst_32 : f32 to vector<24x64xf32>
    %62 = arith.maximumf %60, %61 : vector<24x64xf32>
    %63 = arith.addf %62, %50 : vector<24x64xf32>
    %64 = vector.shape_cast %63 : vector<24x64xf32> to vector<1x24x64xf32>
    %cst_33 = arith.constant dense<0.000000e+00> : vector<1xf32>
    %65 = vector.multi_reduction <add>, %64, %cst_33 [1, 2] : vector<1x24x64xf32> to vector<1xf32>
    %66 = vector.shape_cast %65 : vector<1xf32> to vector<1x1x1xf32>
    %67 = vector.extract %66[0, 0, 0] : f32 from vector<1x1x1xf32>
    %cst_34 = arith.constant 1.536000e+03 : f32
    %68 = arith.divf %67, %cst_34 : f32
    %69 = vector.broadcast %68 : f32 to vector<24x64xf32>
    %70 = arith.subf %63, %69 : vector<24x64xf32>
    %71 = arith.mulf %70, %70 : vector<24x64xf32>
    %72 = vector.shape_cast %71 : vector<24x64xf32> to vector<1x24x64xf32>
    %cst_35 = arith.constant dense<0.000000e+00> : vector<1xf32>
    %73 = vector.multi_reduction <add>, %72, %cst_35 [1, 2] : vector<1x24x64xf32> to vector<1xf32>
    %74 = vector.shape_cast %73 : vector<1xf32> to vector<1x1x1xf32>
    %75 = vector.extract %74[0, 0, 0] : f32 from vector<1x1x1xf32>
    %cst_36 = arith.constant 1.536000e+03 : f32
    %76 = arith.divf %75, %cst_36 : f32
    %77 = vector.broadcast %68 : f32 to vector<24x64xf32>
    %78 = arith.subf %63, %77 : vector<24x64xf32>
    %cst_37 = arith.constant 9.99999974E-6 : f32
    %79 = arith.addf %76, %cst_37 : f32
    %80 = math.rsqrt %79 : f32
    %81 = vector.broadcast %80 : f32 to vector<24x64xf32>
    %82 = arith.mulf %78, %81 : vector<24x64xf32>
    %83 = vector.extract_strided_slice %82 {offsets = [16, 0], sizes = [8, 64], strides = [1, 1]} : vector<24x64xf32> to vector<8x64xf32>
    %c0_38 = arith.constant 0 : index
    %84 = memref.load %arg2[%c0_38] : memref<9xf32, #tpu.memory_space<smem>>
    %85 = vector.broadcast %84 : f32 to vector<8x64xf32>
    %86 = arith.mulf %83, %85 : vector<8x64xf32>
    %c4 = arith.constant 4 : index
    %87 = memref.load %arg2[%c4] : memref<9xf32, #tpu.memory_space<smem>>
    %88 = vector.broadcast %87 : f32 to vector<8x64xf32>
    %89 = arith.addf %86, %88 : vector<8x64xf32>
    %c1 = arith.constant 1 : index
    %90 = memref.load %arg2[%c1] : memref<9xf32, #tpu.memory_space<smem>>
    %91 = vector.broadcast %90 : f32 to vector<8x64xf32>
    %92 = arith.mulf %83, %91 : vector<8x64xf32>
    %c5 = arith.constant 5 : index
    %93 = memref.load %arg2[%c5] : memref<9xf32, #tpu.memory_space<smem>>
    %94 = vector.broadcast %93 : f32 to vector<8x64xf32>
    %95 = arith.addf %92, %94 : vector<8x64xf32>
    %c2 = arith.constant 2 : index
    %96 = memref.load %arg2[%c2] : memref<9xf32, #tpu.memory_space<smem>>
    %97 = vector.broadcast %96 : f32 to vector<8x64xf32>
    %98 = arith.mulf %83, %97 : vector<8x64xf32>
    %c6 = arith.constant 6 : index
    %99 = memref.load %arg2[%c6] : memref<9xf32, #tpu.memory_space<smem>>
    %100 = vector.broadcast %99 : f32 to vector<8x64xf32>
    %101 = arith.addf %98, %100 : vector<8x64xf32>
    %c3 = arith.constant 3 : index
    %102 = memref.load %arg2[%c3] : memref<9xf32, #tpu.memory_space<smem>>
    %103 = vector.broadcast %102 : f32 to vector<8x64xf32>
    %104 = arith.mulf %83, %103 : vector<8x64xf32>
    %c7 = arith.constant 7 : index
    %105 = memref.load %arg2[%c7] : memref<9xf32, #tpu.memory_space<smem>>
    %106 = vector.broadcast %105 : f32 to vector<8x64xf32>
    %107 = arith.addf %104, %106 : vector<8x64xf32>
    %108 = tpu.concatenate %89, %95, %101, %107 in 1 : vector<8x64xf32>, vector<8x64xf32>, vector<8x64xf32>, vector<8x64xf32> -> vector<8x256xf32>
    %cst_39 = arith.constant 0.000000e+00 : f32
    %109 = vector.broadcast %cst_39 : f32 to vector<8x256xf32>
    %110 = arith.maximumf %108, %109 : vector<8x256xf32>
    %c208 = arith.constant 208 : index
    %c0_40 = arith.constant 0 : index
    %111 = vector.load %arg1[%c208, %c0_40] : memref<464x64xf32, #tpu.memory_space<vmem>>, vector<256x64xf32>
    %cst_41 = arith.constant dense<0.000000e+00> : vector<8x64xf32>
    %112 = tpu.matmul %110, %111, %cst_41 {dimension_numbers = #tpu.dot_dimension_numbers<[1], [0], [0], [1], [0, 0, 1, 1], [], []>} : vector<8x256xf32>, vector<256x64xf32>, vector<8x64xf32> -> vector<8x64xf32>
    %cst_42 = arith.constant 0.000000e+00 : f32
    %113 = vector.broadcast %cst_42 : f32 to vector<8x64xf32>
    %114 = tpu.concatenate %112, %113 in 1 : vector<8x64xf32>, vector<8x64xf32> -> vector<8x128xf32>
    %115 = tpu.transpose %114, [1, 0] : vector<8x128xf32> -> vector<128x8xf32>
    %116 = vector.extract_strided_slice %115 {offsets = [0, 0], sizes = [8, 8], strides = [1, 1]} : vector<128x8xf32> to vector<8x8xf32>
    %c8_43 = arith.constant 8 : index
    %117 = memref.load %arg2[%c8_43] : memref<9xf32, #tpu.memory_space<smem>>
    %118 = vector.broadcast %117 : f32 to vector<8x8xf32>
    %119 = arith.addf %116, %118 : vector<8x8xf32>
    %c0_44 = arith.constant 0 : index
    %c0_45 = arith.constant 0 : index
    %120 = vector.load %arg3[%c0_44, %c0_45] : memref<8x8xf32, #tpu.memory_space<vmem>>, vector<8x8xf32>
    tpu.vector_store %arg3[%c0_44, %c0_45], %119 {strides = array<i32>} : memref<8x8xf32, #tpu.memory_space<vmem>>, vector<8x8xf32>,
    return
  }
}

</mosaic_0001>

<bundles_post_ra>
// kernel: model_forward.1
= control target key start
LH: loop header
LB: loop body
LE: loop exit
PB: predicated region body
PF: predicated region fallthrough
CT: control target
= control target key end

     0   :  { %8 = vsyncpa [#allocation5], 0  ;;  %s1196_s0 = inlined_call_operand.vmem [shape: f32[80,16], index: 0, kind: input, shape index: {}]   ;;  %s1197_s1 = inlined_call_operand.vmem [shape: f32[464,64], index: 1, kind: input, shape index: {}]   ;;  %s1198_s2 = inlined_call_operand.vmem [shape: f32[9], index: 2, kind: input, shape index: {}]   ;;  %s1199_s3 = inlined_call_operand.hbm [shape: f32[8,8], index: 3, kind: output, shape index: {}]  }
   0x1   :  { %9 = vsyncpa [#allocation4], 0  ;;  %s19_s14 = sshll.u32 %s1198_s2, 4  ;;  %s830_s15 = smov [#allocation3]   ;;  %s20_s14 = int_to_ptr.vmem [resolvable:$true] %s19_s14 }
   0x2   :  { %22 = dma.vmem_to_smem %s20_s14, 16, %s830_s15, [#allocation5]  }
   0x3   :  { %826 = dma.done.wait [#allocation5], 16  }
   0x4   :  { %827 = vsyncadd [#allocation5], 4294967280 }
   0x5   :  { %27 = sfence }
   0x6   :  { %v33_v0 = vld [vmem:[%s1196_s0 + $0x28] sm:$0xff]  ;;  %v35_v1 = vld [vmem:[%s1196_s0 + $0x38] sm:$0xff]  ;;  %s831_s20 = smov 16   ;;  %v66_v3 = vld [vmem:[%s1197_s1 + $0x10] sm:$0xff]  ;;  %vm58_vm0 = vcmask 130048   ;;  %vm70_vm1 = vcmask 261120  }
   0x7   :  { %43 = vrot.lane.b32.xlu0 %v33_v0, %s831_s20  ;;  %47 = vrot.lane.b32.xlu1 %v35_v1, %s831_s20  ;;  %v67_v2 = vld [vmem:[%s1197_s1 + $0x18] sm:$0xff]  ;;  %v65_v4 = vld [vmem:[%s1197_s1 + $0x8] sm:$0xff]  ;;  %vm139_vm2 = vcmask 195584   ;;  %vm176_vm3 = vcmask 523264   ;;  %s1135_s2 = sld [smem:[#allocation3 + $0x1]]  ;;  %s834_s5 = smov [#allocation6]  }
   0x8   :  { %98 = vmatpush.msra.mxu0 %v67_v2  ;;  %v34_v5 = vld [vmem:[%s1196_s0 + $0x30] sm:$0xff]  ;;  %v64_v6 = vld [vmem:[%s1197_s1] sm:$0xff]  ;;  %v29_v10 = vld [vmem:[%s1196_s0 + $0x8] sm:$0xff]  ;;  %s1143_s25 = sld [smem:[#allocation3 + $0x3]]  ;;  %s707_s6 = sshll.u32 %s834_s5, 4  ;;  %vm700_vm11 = vcmask 64512   ;;  %s708_s6 = int_to_ptr.vmem [resolvable:$true] %s707_s6 }
   0x9   :  { %v28_v7 = vld [vmem:[%s1196_s0] sm:$0xff]  ;;  %v30_v14 = vld [vmem:[%s1196_s0 + $0x10] sm:$0xff]  ;;  %v128_v18 = vld [vmem:[%s1197_s1 + $0x78] sm:$0xff]  ;;  %s750_s26 = sld [smem:[#allocation3 + $0x5]] }
   0xa   :  { %99 = vmatpush.msra.mxu0 %v66_v3  ;;  %v127_v19 = vld [vmem:[%s1197_s1 + $0x70] sm:$0xff]  ;;  %194 = vmatpush.msra.mxu2 %v128_v18  ;;  %v126_v20 = vld [vmem:[%s1197_s1 + $0x68] sm:$0xff]  ;;  %v125_v21 = vld [vmem:[%s1197_s1 + $0x60] sm:$0xff]  ;;  %s556_s29 = sld [smem:[#allocation3]] }
   0xb   :  { %v124_v22 = vld [vmem:[%s1197_s1 + $0x58] sm:$0xff]  ;;  %v915_v23 = vld [vmem:[%s1197_s1 + $0x20] ss:$0 sm:$0xff]  ;;  %v123_v25 = vld [vmem:[%s1197_s1 + $0x50] sm:$0xff] }
   0xc   :  { %100 = vmatpush.msra.mxu0 %v65_v4  ;;  %195 = vmatpush.msra.mxu2 %v127_v19  ;;  %v122_v27 = vld [vmem:[%s1197_s1 + $0x48] sm:$0xff]  ;;  %v945_v31 = vld [vmem:[%s1197_s1 + $0x30] sm:$0xff]  ;;  %v952_v32 = vld [vmem:[%s1197_s1 + $0x38] sm:$0xff] }
   0xd   :  { %v937_v30 = vld [vmem:[%s1197_s1 + $0x28] sm:$0xff]  ;;  %v121_v33 = vld [vmem:[%s1197_s1 + $0x40] sm:$0xff]  ;;  %v136_v39 = vld [vmem:[%s1197_s1 + $0xb8] sm:$0xff] }
   0xe   :  { %101 = vmatpush.msra.mxu0 %v64_v6  ;;  %196 = vmatpush.msra.mxu2 %v126_v20  ;;  %v135_v40 = vld [vmem:[%s1197_s1 + $0xb0] sm:$0xff]  ;;  %v134_v41 = vld [vmem:[%s1197_s1 + $0xa8] sm:$0xff]  ;;  %v133_v42 = vld [vmem:[%s1197_s1 + $0xa0] sm:$0xff] }
   0xf   :  { %45 = vrot.lane.b32.xlu0 %v34_v5, %s831_s20  ;;  %v977_v43 = vld [vmem:[%s1197_s1 + $0xc0] ss:$0 sm:$0xff]  ;;  %v132_v45 = vld [vmem:[%s1197_s1 + $0x98] sm:$0xff]  ;;  %v131_v48 = vld [vmem:[%s1197_s1 + $0x90] sm:$0xff] }
  0x10   :  { %197 = vmatpush.msra.mxu2 %v125_v21  ;;  %v130_v51 = vld [vmem:[%s1197_s1 + $0x88] sm:$0xff]  ;;  %v129_v54 = vld [vmem:[%s1197_s1 + $0x80] sm:$0xff] }
  0x11   :  { %v1006_v59 = vld [vmem:[%s1197_s1 + $0xc8] ss:$0 sm:$0xff] }
  0x12   :  { %198 = vmatpush.msra.mxu2 %v124_v22 }
  0x14   :  { %199 = vmatpush.msra.mxu2 %v123_v25 }
  0x16   :  { %200 = vmatpush.msra.mxu2 %v122_v27 }
  0x18   :  { %201 = vmatpush.msra.mxu2 %v121_v33 }
  0x1a   :  { %400 = vmatpush.msrb.mxu2 %v128_v18 }
  0x1c   :  { %401 = vmatpush.msrb.mxu2 %v127_v19 }
  0x1e   :  { %402 = vmatpush.msrb.mxu2 %v126_v20 }
  0x20   :  { %403 = vmatpush.msrb.mxu2 %v125_v21 }
  0x22   :  { %404 = vmatpush.msrb.mxu2 %v124_v22 }
  0x24   :  { %405 = vmatpush.msrb.mxu2 %v123_v25 }
  0x26   :  { %406 = vmatpush.msrb.mxu2 %v122_v27 }
  0x28   :  { %407 = vmatpush.msrb.mxu2 %v121_v33 }
  0x79   :  { %v44_v8 = vpop.permute.xlu0 %43  ;;  %v48_v13 = vpop.permute.xlu1 %47 }
  0x7a   :  { %v59_v9 = vsel %vm58_vm0, %v28_v7, %v44_v8  ;;  %v61_v15 = vsel %vm58_vm0, %v30_v14, %v48_v13  ;;  %v36_v13 = vld [vmem:[%s1196_s0 + $0x40] sm:$0xff]  ;;  %v832_v14 = vmov 1536.0  }
  0x7b   :  { %719 = vmatmul.msk.f32.vlgmr.msra.gmra.mxu0 %vm70_vm1, %v59_v9  ;;  %49 = vrot.lane.b32.xlu2 %v36_v13, %s831_s20  ;;  %784 = vrcp.f32 %v832_v14 }
  0x81   :  { %v46_v11 = vpop.permute.xlu0 %45 }
  0x82   :  { %v60_v12 = vsel %vm58_vm0, %v29_v10, %v46_v11 }
  0x83   :  { %720 = vmatmul.msk.f32.gmra.mxu0 %vm70_vm1, %v60_v12  ;;  %v37_v12 = vld [vmem:[%s1196_s0 + $0x48] sm:$0xff] }
  0x84   :  { %51 = vrot.lane.b32.xlu0 %v37_v12, %s831_s20 }
  0x8b   :  { %721 = vmatmul.msk.f32.gmra.mxu0 %vm70_vm1, %v61_v15  ;;  %v785_v15 = vpop.eup %784 }
  0x8c   :  { %vm302_vm4 = vweird.f32 %v785_v15 }
  0xf8   :  { %v103_v16 = vpop.f32.mrf.mxu0 }
  0xf9   :  { %v931_v29 = vadd.f32 %v915_v23, %v103_v16  ;;  %v298_v16 = vmul.f32 1536.0, %v785_v15 }
 0x100   :  { %v106_v17 = vpop.f32.mrf.mxu0 }
 0x101   :  { %v927_v28 = vadd.f32 %v915_v23, %v106_v17  ;;  %v299_v17 = vsub.f32 1.0, %v298_v16 }
 0x103   :  { %v300_v21 = vmul.f32 %v785_v15, %v299_v17 }
 0x105   :  { %v301_v25 = vadd.f32 %v785_v15, %v300_v21 }
 0x108   :  { %v109_v24 = vpop.f32.mrf.mxu0 }
 0x109   :  { %v921_v26 = vadd.f32 %v915_v23, %v109_v24 }
 0x10b   :  { %162 = vmatpush.msra.mxu1 %v921_v26 }
 0x10d   :  { %163 = vmatpush.msra.mxu1 %v927_v28 }
 0x10f   :  { %164 = vmatpush.msra.mxu1 %v931_v29 }
 0x110   :  { %724 = vmatmul.msk.f32.vlgmr.msra.gmra.mxu1 %vm139_vm2, %v937_v30 }
 0x111   :  { %259 = vmatpush.msrb.mxu1 %v136_v39 }
 0x113   :  { %260 = vmatpush.msrb.mxu1 %v135_v40 }
 0x115   :  { %261 = vmatpush.msrb.mxu1 %v134_v41 }
 0x117   :  { %262 = vmatpush.msrb.mxu1 %v133_v42 }
 0x118   :  { %725 = vmatmul.msk.f32.gmra.mxu1 %vm139_vm2, %v945_v31 }
 0x119   :  { %263 = vmatpush.msrb.mxu1 %v132_v45 }
 0x11b   :  { %264 = vmatpush.msrb.mxu1 %v131_v48 }
 0x11d   :  { %265 = vmatpush.msrb.mxu1 %v130_v51 }
 0x11f   :  { %266 = vmatpush.msrb.mxu1 %v129_v54 }
 0x120   :  { %726 = vmatmul.msk.f32.gmra.mxu1 %vm139_vm2, %v952_v32 }
 0x121   :  { %464 = vmatpush.msra.mxu1 %v136_v39 }
 0x123   :  { %465 = vmatpush.msra.mxu1 %v135_v40 }
 0x125   :  { %466 = vmatpush.msra.mxu1 %v134_v41  ;;  %v31_v41 = vld [vmem:[%s1196_s0 + $0x18] sm:$0xff] }
 0x127   :  { %467 = vmatpush.msra.mxu1 %v133_v42 }
 0x129   :  { %468 = vmatpush.msra.mxu1 %v132_v45  ;;  %v50_v45 = vpop.permute.xlu2 %49 }
 0x12b   :  { %469 = vmatpush.msra.mxu1 %v131_v48  ;;  %v32_v48 = vld [vmem:[%s1196_s0 + $0x20] sm:$0xff] }
 0x12d   :  { %470 = vmatpush.msra.mxu1 %v130_v51 }
 0x12f   :  { %471 = vmatpush.msra.mxu1 %v129_v54 }
 0x18d   :  { %v166_v34 = vpop.f32.mrf.mxu1 }
 0x18e   :  { %727 = vmatmul.msk.f32.vlgmr.msra.gmra.mxu2 %vm176_vm3, %v166_v34 }
 0x195   :  { %v169_v35 = vpop.f32.mrf.mxu1 }
 0x196   :  { %728 = vmatmul.msk.f32.gmra.mxu2 %vm176_vm3, %v169_v35 }
 0x19d   :  { %v172_v36 = vpop.f32.mrf.mxu1 }
 0x19e   :  { %729 = vmatmul.msk.f32.gmra.mxu2 %vm176_vm3, %v172_v36 }
 0x211   :  { %v203_v37 = vpop.f32.mrf.mxu2 }
 0x212   :  { %v204_v49 = vadd.f32 %v977_v43, %v203_v37 }
 0x214   :  { %v212_v53 = vmax.f32 %v204_v49, 0.0  ;;  %v52_v49 = vpop.permute.xlu0 %51 }
 0x219   :  { %v206_v38 = vpop.f32.mrf.mxu2 }
 0x21a   :  { %v207_v46 = vadd.f32 %v977_v43, %v206_v38 }
 0x21c   :  { %v213_v52 = vmax.f32 %v207_v46, 0.0 }
 0x221   :  { %v209_v44 = vpop.f32.mrf.mxu2 }
 0x222   :  { %v210_v47 = vadd.f32 %v977_v43, %v209_v44 }
 0x224   :  { %v214_v50 = vmax.f32 %v210_v47, 0.0  ;;  %v62_v47 = vsel %vm58_vm0, %v31_v41, %v50_v45 }
 0x225   :  { %722 = vmatmul.msk.f32.gmra.mxu0 %vm70_vm1, %v62_v47 }
 0x226   :  { %228 = vmatpush.msra.mxu3 %v214_v50  ;;  %v63_v50 = vsel %vm58_vm0, %v32_v48, %v52_v49 }
 0x228   :  { %229 = vmatpush.msra.mxu3 %v213_v52 }
 0x22a   :  { %230 = vmatpush.msra.mxu3 %v212_v53 }
 0x22b   :  { %730 = vmatmul.msk.f32.vlgmr.msra.gmra.mxu3 %vm139_vm2, %v937_v30 }
 0x22d   :  { %723 = vmatmul.msk.f32.gmra.mxu0 %vm70_vm1, %v63_v50 }
 0x233   :  { %731 = vmatmul.msk.f32.gmra.mxu3 %vm139_vm2, %v945_v31 }
 0x23b   :  { %732 = vmatmul.msk.f32.gmra.mxu3 %vm139_vm2, %v952_v32 }
 0x2ae   :  { %v232_v55 = vpop.f32.mrf.mxu3 }
 0x2af   :  { %733 = vmatmul.msk.f32.vlgmr.msrb.gmra.mxu1 %vm176_vm3, %v232_v55 }
 0x2b6   :  { %v235_v56 = vpop.f32.mrf.mxu3 }
 0x2b7   :  { %734 = vmatmul.msk.f32.gmra.mxu1 %vm176_vm3, %v235_v56 }
 0x2be   :  { %v238_v57 = vpop.f32.mrf.mxu3 }
 0x2bf   :  { %735 = vmatmul.msk.f32.gmra.mxu1 %vm176_vm3, %v238_v57  ;;  %v112_v57 = vpop.f32.mrf.mxu0 }
 0x32c   :  { %v268_v58 = vpop.f32.mrf.mxu1 }
 0x32d   :  { %v269_v61 = vadd.f32 %v1006_v59, %v268_v58  ;;  %v113_v58 = vadd.f32 %v915_v23, %v112_v57 }
 0x32f   :  { %v277_v0 = vmax.f32 %v269_v61, 0.0  ;;  %352 = vst.msk [vmem:[#allocation2 + $0x8] sm:$0xff] %vm176_vm3, %v113_v58  ;;  %v115_v61 = vpop.f32.mrf.mxu0 }
 0x331   :  { %v280_v3 = vadd.f32 %v277_v0, %v931_v29 }
 0x333   :  { %v283_v8 = vsel %vm176_vm3, %v280_v3, 0.0 }
 0x334   :  { %v271_v60 = vpop.f32.mrf.mxu1 }
 0x335   :  { %v272_v62 = vadd.f32 %v1006_v59, %v271_v60 }
 0x336   :  { %v355_v0 = vld [vmem:[#allocation2 + $0x8] sm:$0xff] }
 0x337   :  { %v278_v63 = vmax.f32 %v272_v62, 0.0  ;;  %v116_v62 = vadd.f32 %v915_v23, %v115_v61 }
 0x339   :  { %v281_v1 = vadd.f32 %v278_v63, %v927_v28  ;;  %v303_v28 = vsel %vm302_vm4, %v785_v15, %v301_v25  ;;  %353 = vst.msk [vmem:[#allocation2 + $0x10] sm:$0xff] %vm176_vm3, %v116_v62 }
 0x33b   :  { %v284_v6 = vsel %vm176_vm3, %v281_v1, 0.0 }
 0x33c   :  { %v274_v2 = vpop.f32.mrf.mxu1  ;;  %v285_v9 = vadd.f32 %v284_v6, %v283_v8 }
 0x33d   :  { %v275_v4 = vadd.f32 %v1006_v59, %v274_v2 }
 0x33f   :  { %v279_v5 = vmax.f32 %v275_v4, 0.0 }
 0x340   :  { %v1045_v63 = vld [vmem:[#allocation2 + $0x10] sm:$0xff] }
 0x341   :  { %v282_v7 = vadd.f32 %v279_v5, %v921_v26  ;;  %370 = vmatpush.msrb.mxu3 %v1045_v63 }
 0x343   :  { %v286_v10 = vsel %vm176_vm3, %v282_v7, 0.0  ;;  %371 = vmatpush.msrb.mxu3 %v355_v0 }
 0x344   :  { %v287_v11 = vadd.f32 %v286_v10, %v285_v9 }
 0x346   :  { %288 = vadd.xlane.f32.xlu1 %v287_v11 }
 0x3b9   :  { %v289_v18 = vpop.xlane.xlu1 %288 }
 0x3ba   :  { %v290_v19 = vrot.slane %v289_v18, 4 }
 0x3bc   :  { %v291_v20 = vadd.f32 %v290_v19, %v289_v18 }
 0x3be   :  { %v292_v22 = vrot.slane %v291_v20, 2 }
 0x3c0   :  { %v293_v24 = vadd.f32 %v292_v22, %v291_v20 }
 0x3c2   :  { %v294_v26 = vrot.slane %v293_v24, 1 }
 0x3c4   :  { %v295_v27 = vadd.f32 %v294_v26, %v293_v24 }
 0x3c6   :  { %756 = vpush %v295_v27 }
 0x3c7   :  { %758 = vpush %v303_v28 }
 0x3f7   :  { %s757_s30 = spop %756 }
 0x3f8   :  { %s1025_s20 = spop %758 }
 0x3f9   :  { %s305_s4 = smul.f32 %s1025_s20, %s757_s30  ;;  %s751_s30 = sld [smem:[#allocation3 + $0x2]] }
 0x3fb   :  { %v306_v29 = vstv %s305_s4  ;;  %s752_s4 = sld [smem:[#allocation3 + $0x6]] }
 0x3fc   :  { %v307_v33 = vsub.f32 %v280_v3, %v306_v29  ;;  %v308_v34 = vsub.f32 %v281_v1, %v306_v29  ;;  %v309_v35 = vsub.f32 %v282_v7, %v306_v29 }
 0x3fe   :  { %v310_v36 = vmul.f32 %v307_v33, %v307_v33  ;;  %v311_v37 = vmul.f32 %v308_v34, %v308_v34  ;;  %v312_v38 = vmul.f32 %v309_v35, %v309_v35 }
 0x400   :  { %v313_v39 = vsel %vm176_vm3, %v310_v36, 0.0  ;;  %v314_v40 = vsel %vm176_vm3, %v311_v37, 0.0  ;;  %v316_v44 = vsel %vm176_vm3, %v312_v38, 0.0 }
 0x401   :  { %v315_v42 = vadd.f32 %v314_v40, %v313_v39 }
 0x403   :  { %v317_v46 = vadd.f32 %v316_v44, %v315_v42 }
 0x405   :  { %318 = vadd.xlane.f32.xlu2 %v317_v46 }
 0x478   :  { %v319_v51 = vpop.xlane.xlu2 %318 }
 0x479   :  { %v320_v52 = vrot.slane %v319_v51, 4 }
 0x47b   :  { %v321_v53 = vadd.f32 %v320_v52, %v319_v51 }
 0x47d   :  { %v322_v54 = vrot.slane %v321_v53, 2 }
 0x47f   :  { %v323_v55 = vadd.f32 %v322_v54, %v321_v53 }
 0x481   :  { %v324_v56 = vrot.slane %v323_v55, 1 }
 0x483   :  { %v325_v60 = vadd.f32 %v324_v56, %v323_v55 }
 0x485   :  { %760 = vpush %v325_v60 }
 0x4b6   :  { %s761_s0 = spop %760 }
 0x4b7   :  { %s335_s9 = smul.f32 %s761_s0, %s1025_s20  ;;  %s709_s0 = sshll.u32 %s1199_s3, 4  ;;  %s710_s0 = int_to_ptr.hbm [resolvable:$true] %s709_s0 }
 0x4b9   :  { %s336_s10 = sadd.f32 1e-05, %s335_s9 }
 0x4bb   :  { %v337_v1 = vstv %s336_s10 }
 0x4bc   :  { %786 = vrsqrt.f32 %v337_v1  ;;  %vm344_vm6 = vweird.f32 %v337_v1 }
 0x4c2   :  { %v787_v2 = vpop.eup %786 }
 0x4c3   :  { %v339_v3 = vmul.f32 %v787_v2, %v337_v1  ;;  %vm345_vm5 = vweird.f32 %v787_v2 }
 0x4c4   :  { %vm346_vm7 = vmor %vm344_vm6, %vm345_vm5 }
 0x4c5   :  { %v340_v4 = vmul.f32 %v787_v2, %v339_v3 }
 0x4c7   :  { %v341_v5 = vmul.f32 0.5, %v340_v4 }
 0x4c9   :  { %v342_v6 = vsub.f32 1.5, %v341_v5 }
 0x4cb   :  { %v343_v23 = vmul.f32 %v787_v2, %v342_v6 }
 0x4cd   :  { %v347_v7 = vsel %vm346_vm7, %v787_v2, %v343_v23 }
 0x4ce   :  { %762 = vpush %v347_v7 }
 0x4ff   :  { %s763_s11 = spop %762 }
 0x500   :  { %v349_v8 = vstv %s763_s11 }
 0x501   :  { %v350_v9 = vmul.f32 %v349_v8, %v309_v35 }
 0x503   :  { %351 = vst.msk [vmem:[#allocation2] sm:$0xff] %vm176_vm3, %v350_v9 }
 0x50a   :  { %v354_v10 = vld [vmem:[#allocation2] sm:$0xff] }
 0x50b   :  { %372 = vmatpush.msrb.mxu3 %v354_v10 }
 0x50c   :  { %736 = vmatmul.msk.f32.vlgmr.msrb.gmra.mxu3 %vm139_vm2, %v937_v30 }
 0x514   :  { %737 = vmatmul.msk.f32.gmra.mxu3 %vm139_vm2, %v945_v31 }
 0x51c   :  { %738 = vmatmul.msk.f32.gmra.mxu3 %vm139_vm2, %v952_v32 }
 0x58f   :  { %v374_v11 = vpop.f32.mrf.mxu3 }
 0x590   :  { %739 = vmatmul.msk.f32.vlgmr.msrb.gmra.mxu2 %vm176_vm3, %v374_v11 }
 0x597   :  { %v377_v12 = vpop.f32.mrf.mxu3 }
 0x598   :  { %740 = vmatmul.msk.f32.gmra.mxu2 %vm176_vm3, %v377_v12 }
 0x59f   :  { %v380_v13 = vpop.f32.mrf.mxu3 }
 0x5a0   :  { %741 = vmatmul.msk.f32.gmra.mxu2 %vm176_vm3, %v380_v13  ;;  %v607_v13 = vld [vmem:[%s1197_s1 + $0x148] sm:$0xff] }
 0x5a1   :  { %624 = vmatpush.msra.mxu3 %v607_v13 }
 0x613   :  { %v409_v14 = vpop.f32.mrf.mxu2 }
 0x614   :  { %v410_v19 = vadd.f32 %v977_v43, %v409_v14  ;;  %v623_v14 = vld [vmem:[%s1197_s1 + $0x1c8] sm:$0xff] }
 0x615   :  { %644 = vmatpush.msra.mxu2 %v623_v14 }
 0x616   :  { %v418_v22 = vmax.f32 %v410_v19, 0.0  ;;  %v604_v19 = vld [vmem:[%s1197_s1 + $0x130] sm:$0xff] }
 0x61b   :  { %v412_v15 = vpop.f32.mrf.mxu2 }
 0x61c   :  { %v413_v17 = vadd.f32 %v977_v43, %v412_v15  ;;  %v606_v15 = vld [vmem:[%s1197_s1 + $0x140] sm:$0xff] }
 0x61d   :  { %625 = vmatpush.msra.mxu3 %v606_v15 }
 0x61e   :  { %v419_v21 = vmax.f32 %v413_v17, 0.0  ;;  %v605_v17 = vld [vmem:[%s1197_s1 + $0x138] sm:$0xff] }
 0x61f   :  { %626 = vmatpush.msra.mxu3 %v605_v17 }
 0x621   :  { %627 = vmatpush.msra.mxu3 %v604_v19 }
 0x623   :  { %v415_v16 = vpop.f32.mrf.mxu2 }
 0x624   :  { %v416_v18 = vadd.f32 %v977_v43, %v415_v16  ;;  %v622_v16 = vld [vmem:[%s1197_s1 + $0x1c0] sm:$0xff] }
 0x625   :  { %645 = vmatpush.msra.mxu2 %v622_v16 }
 0x626   :  { %v420_v20 = vmax.f32 %v416_v18, 0.0  ;;  %v621_v18 = vld [vmem:[%s1197_s1 + $0x1b8] sm:$0xff] }
 0x627   :  { %646 = vmatpush.msra.mxu2 %v621_v18 }
 0x628   :  { %434 = vmatpush.msrb.mxu0 %v420_v20  ;;  %v620_v20 = vld [vmem:[%s1197_s1 + $0x1b0] sm:$0xff] }
 0x629   :  { %647 = vmatpush.msra.mxu2 %v620_v20 }
 0x62a   :  { %435 = vmatpush.msrb.mxu0 %v419_v21  ;;  %v603_v21 = vld [vmem:[%s1197_s1 + $0x128] sm:$0xff] }
 0x62b   :  { %628 = vmatpush.msra.mxu3 %v603_v21 }
 0x62c   :  { %436 = vmatpush.msrb.mxu0 %v418_v22  ;;  %v619_v22 = vld [vmem:[%s1197_s1 + $0x1a8] sm:$0xff] }
 0x62d   :  { %742 = vmatmul.msk.f32.vlgmr.msrb.gmra.mxu0 %vm139_vm2, %v937_v30  ;;  %648 = vmatpush.msra.mxu2 %v619_v22 }
 0x635   :  { %743 = vmatmul.msk.f32.gmra.mxu0 %vm139_vm2, %v945_v31 }
 0x63d   :  { %744 = vmatmul.msk.f32.gmra.mxu0 %vm139_vm2, %v952_v32 }
 0x6aa   :  { %v438_v24 = vpop.f32.mrf.mxu0 }
 0x6ab   :  { %745 = vmatmul.msk.f32.vlgmr.msra.gmra.mxu1 %vm176_vm3, %v438_v24  ;;  %v602_v24 = vld [vmem:[%s1197_s1 + $0x120] sm:$0xff] }
 0x6ac   :  { %629 = vmatpush.msra.mxu3 %v602_v24 }
 0x6b2   :  { %v441_v25 = vpop.f32.mrf.mxu0 }
 0x6b3   :  { %746 = vmatmul.msk.f32.gmra.mxu1 %vm176_vm3, %v441_v25  ;;  %v618_v25 = vld [vmem:[%s1197_s1 + $0x1a0] sm:$0xff] }
 0x6b4   :  { %649 = vmatpush.msra.mxu2 %v618_v25 }
 0x6ba   :  { %v444_v43 = vpop.f32.mrf.mxu0 }
 0x6bb   :  { %747 = vmatmul.msk.f32.gmra.mxu1 %vm176_vm3, %v444_v43  ;;  %v601_v43 = vld [vmem:[%s1197_s1 + $0x118] sm:$0xff] }
 0x6bc   :  { %630 = vmatpush.msra.mxu3 %v601_v43 }
 0x728   :  { %v473_v26 = vpop.f32.mrf.mxu1 }
 0x729   :  { %v474_v28 = vadd.f32 %v1006_v59, %v473_v26  ;;  %v617_v26 = vld [vmem:[%s1197_s1 + $0x198] sm:$0xff] }
 0x72a   :  { %650 = vmatpush.msra.mxu2 %v617_v26 }
 0x72b   :  { %v482_v31 = vmax.f32 %v474_v28, 0.0  ;;  %v616_v28 = vld [vmem:[%s1197_s1 + $0x190] sm:$0xff] }
 0x72c   :  { %651 = vmatpush.msra.mxu2 %v616_v28 }
 0x72d   :  { %v485_v32 = vadd.f32 %v482_v31, %v354_v10  ;;  %v598_v31 = vld [vmem:[%s1197_s1 + $0x100] sm:$0xff] }
 0x72f   :  { %v488_v39 = vsel %vm176_vm3, %v485_v32, 0.0 }
 0x730   :  { %v476_v27 = vpop.f32.mrf.mxu1 }
 0x731   :  { %v477_v30 = vadd.f32 %v1006_v59, %v476_v27  ;;  %v600_v27 = vld [vmem:[%s1197_s1 + $0x110] sm:$0xff] }
 0x732   :  { %631 = vmatpush.msra.mxu3 %v600_v27 }
 0x733   :  { %v483_v29 = vmax.f32 %v477_v30, 0.0  ;;  %v599_v30 = vld [vmem:[%s1197_s1 + $0x108] sm:$0xff] }
 0x734   :  { %632 = vmatpush.msra.mxu3 %v599_v30 }
 0x735   :  { %v486_v33 = vadd.f32 %v483_v29, %v355_v0  ;;  %v615_v29 = vld [vmem:[%s1197_s1 + $0x188] sm:$0xff] }
 0x736   :  { %652 = vmatpush.msra.mxu2 %v615_v29  ;;  %633 = vmatpush.msra.mxu3 %v598_v31 }
 0x737   :  { %v489_v37 = vsel %vm176_vm3, %v486_v33, 0.0 }
 0x738   :  { %v479_v34 = vpop.f32.mrf.mxu1  ;;  %v490_v40 = vadd.f32 %v489_v37, %v488_v39  ;;  %v595_v37 = vld [vmem:[%s1197_s1 + $0xe8] sm:$0xff] }
 0x739   :  { %v480_v35 = vadd.f32 %v1006_v59, %v479_v34  ;;  %v597_v34 = vld [vmem:[%s1197_s1 + $0xf8] sm:$0xff] }
 0x73a   :  { %634 = vmatpush.msra.mxu3 %v597_v34 }
 0x73b   :  { %v484_v36 = vmax.f32 %v480_v35, 0.0  ;;  %v596_v35 = vld [vmem:[%s1197_s1 + $0xf0] sm:$0xff] }
 0x73c   :  { %635 = vmatpush.msra.mxu3 %v596_v35 }
 0x73d   :  { %v487_v38 = vadd.f32 %v484_v36, %v1045_v63  ;;  %v612_v36 = vld [vmem:[%s1197_s1 + $0x170] sm:$0xff] }
 0x73e   :  { %636 = vmatpush.msra.mxu3 %v595_v37 }
 0x73f   :  { %v491_v41 = vsel %vm176_vm3, %v487_v38, 0.0 }
 0x740   :  { %v492_v42 = vadd.f32 %v491_v41, %v490_v40  ;;  %v563_v40 = vstv %s1135_s2  ;;  %v575_v41 = vstv %s1143_s25 }
 0x742   :  { %493 = vadd.xlane.f32.xlu0 %v492_v42 }
 0x7b5   :  { %v494_v44 = vpop.xlane.xlu0 %493 }
 0x7b6   :  { %v495_v45 = vrot.slane %v494_v44, 4 }
 0x7b8   :  { %v496_v46 = vadd.f32 %v495_v45, %v494_v44  ;;  %v566_v44 = vstv %s750_s26 }
 0x7ba   :  { %v497_v47 = vrot.slane %v496_v46, 2 }
 0x7bc   :  { %v498_v48 = vadd.f32 %v497_v47, %v496_v46 }
 0x7be   :  { %v499_v49 = vrot.slane %v498_v48, 1 }
 0x7c0   :  { %v500_v59 = vadd.f32 %v499_v49, %v498_v48 }
 0x7c2   :  { %764 = vpush %v500_v59 }
 0x7f3   :  { %s765_s12 = spop %764 }
 0x7f4   :  { %s510_s13 = smul.f32 %s765_s12, %s1025_s20 }
 0x7f6   :  { %v511_v50 = vstv %s510_s13 }
 0x7f7   :  { %v512_v51 = vsub.f32 %v485_v32, %v511_v50  ;;  %v513_v52 = vsub.f32 %v486_v33, %v511_v50  ;;  %v1079_v53 = vsub.f32 %v487_v38, %v511_v50  ;;  %v614_v33 = vld [vmem:[%s1197_s1 + $0x180] sm:$0xff]  ;;  %v613_v32 = vld [vmem:[%s1197_s1 + $0x178] sm:$0xff]  ;;  %v611_v38 = vld [vmem:[%s1197_s1 + $0x168] sm:$0xff] }
 0x7f8   :  { %653 = vmatpush.msra.mxu2 %v614_v33  ;;  %v594_v50 = vld [vmem:[%s1197_s1 + $0xe0] sm:$0xff] }
 0x7f9   :  { %v515_v54 = vmul.f32 %v512_v51, %v512_v51  ;;  %v516_v55 = vmul.f32 %v513_v52, %v513_v52  ;;  %v517_v56 = vmul.f32 %v1079_v53, %v1079_v53  ;;  %v610_v51 = vld [vmem:[%s1197_s1 + $0x160] sm:$0xff]  ;;  %637 = vmatpush.msra.mxu3 %v594_v50  ;;  %v593_v52 = vld [vmem:[%s1197_s1 + $0xd8] sm:$0xff] }
 0x7fa   :  { %654 = vmatpush.msra.mxu2 %v613_v32 }
 0x7fb   :  { %v518_v57 = vsel %vm176_vm3, %v515_v54, 0.0  ;;  %v519_v58 = vsel %vm176_vm3, %v516_v55, 0.0  ;;  %v521_v61 = vsel %vm176_vm3, %v517_v56, 0.0  ;;  %638 = vmatpush.msra.mxu3 %v593_v52  ;;  %v592_v54 = vld [vmem:[%s1197_s1 + $0xd0] sm:$0xff]  ;;  %v557_v56 = vstv %s556_s29 }
 0x7fc   :  { %v520_v60 = vadd.f32 %v519_v58, %v518_v57  ;;  %655 = vmatpush.msra.mxu2 %v612_v36  ;;  %v608_v55 = vld [vmem:[%s1197_s1 + $0x150] sm:$0xff]  ;;  %v569_v57 = vstv %s751_s30 }
 0x7fd   :  { %639 = vmatpush.msra.mxu3 %v592_v54 }
 0x7fe   :  { %v522_v62 = vadd.f32 %v521_v61, %v520_v60  ;;  %656 = vmatpush.msra.mxu2 %v611_v38 }
 0x800   :  { %523 = vadd.xlane.f32.xlu2 %v522_v62  ;;  %657 = vmatpush.msra.mxu2 %v610_v51  ;;  %v572_v62 = vstv %s752_s4 }
 0x873   :  { %v524_v63 = vpop.xlane.xlu2 %523 }
 0x874   :  { %v525_v0 = vrot.slane %v524_v63, 4 }
 0x876   :  { %v526_v1 = vadd.f32 %v525_v0, %v524_v63 }
 0x878   :  { %v527_v2 = vrot.slane %v526_v1, 2 }
 0x87a   :  { %v528_v3 = vadd.f32 %v527_v2, %v526_v1 }
 0x87c   :  { %v529_v4 = vrot.slane %v528_v3, 1 }
 0x87e   :  { %v530_v5 = vadd.f32 %v529_v4, %v528_v3 }
 0x880   :  { %766 = vpush %v530_v5 }
 0x8b1   :  { %s767_s14 = spop %766 }
 0x8b2   :  { %s540_s15 = smul.f32 %s767_s14, %s1025_s20  ;;  %s754_s20 = sld [smem:[#allocation3 + $0x7]] }
 0x8b4   :  { %s541_s16 = sadd.f32 1e-05, %s540_s15 }
 0x8b6   :  { %v542_v6 = vstv %s541_s16  ;;  %s833_s16 = smov 64  }
 0x8b7   :  { %788 = vrsqrt.f32 %v542_v6  ;;  %vm549_vm9 = vweird.f32 %v542_v6 }
 0x8b8   :  { %v578_v45 = vstv %s754_s20  ;;  %s748_s20 = sld [smem:[#allocation3 + $0x4]] }
 0x8bd   :  { %v789_v23 = vpop.eup %788 }
 0x8be   :  { %v544_v7 = vmul.f32 %v789_v23, %v542_v6  ;;  %vm550_vm8 = vweird.f32 %v789_v23  ;;  %v560_v61 = vstv %s748_s20 }
 0x8bf   :  { %vm551_vm10 = vmor %vm549_vm9, %vm550_vm8 }
 0x8c0   :  { %v545_v8 = vmul.f32 %v789_v23, %v544_v7 }
 0x8c2   :  { %v546_v9 = vmul.f32 0.5, %v545_v8 }
 0x8c4   :  { %v547_v10 = vsub.f32 1.5, %v546_v9 }
 0x8c6   :  { %v548_v11 = vmul.f32 %v789_v23, %v547_v10 }
 0x8c8   :  { %v552_v12 = vsel %vm551_vm10, %v789_v23, %v548_v11 }
 0x8c9   :  { %768 = vpush %v552_v12 }
 0x8fa   :  { %s769_s11 = spop %768 }
 0x8fb   :  { %v554_v39 = vstv %s769_s11 }
 0x8fc   :  { %v555_v42 = vmul.f32 %v554_v39, %v1079_v53  ;;  %v609_v53 = vld [vmem:[%s1197_s1 + $0x158] sm:$0xff]  ;;  %s755_s1 = sld [smem:[#allocation3 + $0x8]] }
 0x8fd   :  { %658 = vmatpush.msra.mxu2 %v609_v53 }
 0x8fe   :  { %v564_v46 = vmul.f32 %v563_v40, %v555_v42  ;;  %v576_v47 = vmul.f32 %v575_v41, %v555_v42  ;;  %v558_v58 = vmul.f32 %v557_v56, %v555_v42  ;;  %v570_v60 = vmul.f32 %v569_v57, %v555_v42 }
 0x8ff   :  { %659 = vmatpush.msra.mxu2 %v608_v55 }
 0x900   :  { %v567_v48 = vadd.f32 %v566_v44, %v564_v46  ;;  %v579_v49 = vadd.f32 %v578_v45, %v576_v47  ;;  %v573_v0 = vadd.f32 %v572_v62, %v570_v60  ;;  %v561_v3 = vadd.f32 %v560_v61, %v558_v58 }
 0x902   :  { %v776_v59 = vpack.i.bf16 %v579_v49, %v567_v48  ;;  %v698_v11 = vstv %s755_s1 }
 0x904   :  { %777 = vrot.lane.b32.xlu1 %v776_v59, %s833_s16 }
 0x976   :  { %v778_v63 = vpop.permute.xlu1 %777 }
 0x977   :  { %v780_v1 = vunpack.i.h.bf16 %v778_v63  ;;  %v779_v2 = vunpack.i.l.bf16 %v778_v63 }
 0x979   :  { %v589_v4 = vsel %vm176_vm3, %v573_v0, %v780_v1  ;;  %v588_v5 = vsel %vm176_vm3, %v561_v3, %v779_v2 }
 0x97a   :  { %v591_v6 = vmax.f32 %v589_v4, 0.0  ;;  %v590_v23 = vmax.f32 %v588_v5, 0.0 }
 0x97c   :  { %640 = vmatmul.f32.vlgmr.msra.gmra.mxu3 %v590_v23  ;;  %660 = vmatmul.f32.vlgmr.msra.gmra.mxu2 %v591_v6 }
 0x9ff   :  { %v641_v7 = vpop.f32.mrf.mxu3  ;;  %v661_v8 = vpop.f32.mrf.mxu2 }
 0xa00   :  { %v662_v9 = vadd.f32 %v661_v8, %v641_v7 }
 0xa02   :  { %v664_v10 = vsel %vm176_vm3, %v662_v9, 0.0 }
 0xa03   :  { %665 = vxpose.xlu2.b32.start.end [1/1] (short) (narrow) %v664_v10, 8 }
 0xa9c   :  { %v681_v12 = vpop.trf.xlu2 }
 0xa9d   :  { %v699_v13 = vadd.f32 %v698_v11, %v681_v12 }
 0xa9f   :  { %701 = vst.msk [vmem:[#allocation6] sm:$0xff] %vm700_vm11, %v699_v13 }
 0xaa0   :  { %712 = dma.vmem_to_hbm [thread:$0]  %s708_s6, 128, %s710_s0, [#allocation4]  }
 0xaa1   :  { %828 = dma.done.wait [#allocation4], 128  }
 0xaa2   :  { %829 = vsyncadd [#allocation4], 4294967168 }
 0xaa3   :  { %717 = vsyncpa [#allocation4], 1 }
 0xaa4   :  { %718 = vsyncpa [#allocation5], 1 }

</bundles_post_ra>
